<compile_context>
chip_gen: v7x
topology: tpu7x:2x2x1
jax: 0.10.0
libtpu: 0.0.40
codegen_flags: <defaults>
</compile_context>

<pallas_src>
import math
from functools import partial

import jax
import jax.numpy as jnp
from jax import lax
from jax.experimental import pallas as pl
from jax.experimental.pallas import tpu as pltpu


# ---------------------------------------------------------------------------
# Kernel 1: fused QKV projection -> head-major packed QKV (3, B, H, L, d_h)
# ---------------------------------------------------------------------------
def _qkv_proj_kernel(x_ref, w_ref, b_ref, qkv_ref, *, n_head: int, d_h: int,
                     compute_dtype):
    # grid = (3, B, L/tm); the projection index is OUTERMOST, so each (D, D)
    # weight slab is fetched once and only one slab is resident at a time.
    x = x_ref[0].astype(compute_dtype)                         # (tm, D)
    # Full-width (tm, D) x (D, D) MXU matmul, f32 accumulation; bias in f32.
    y = jnp.dot(x, w_ref[0].astype(compute_dtype),
                preferred_element_type=jnp.float32)
    y = (y + b_ref[0]).astype(qkv_ref.dtype)                   # (tm, D)
    # Head-major layout-only stores so the (hot) attention kernel never slices
    # lanes or relays out per step.
    # TODO(synk): for d_h < 128 these stores are lane-masked; the cost is hidden
    # under the (tm,D)x(D,D) MXU matmul that dominates this kernel.
    for h in range(n_head):
        qkv_ref[0, 0, h] = y[:, h * d_h:(h + 1) * d_h]


# ---------------------------------------------------------------------------
# Kernel 2: flash attention (online softmax over KV blocks) + fused W_O
# ---------------------------------------------------------------------------
def _flash_attn_kernel(q_ref, k_ref, v_ref, wo_ref, bo_ref, o_ref,
                       m_scr, l_scr, acc_scr,
                       *, is_causal: bool, compute_dtype):
    qi = pl.program_id(1)
    ki = pl.program_id(2)
    nk = pl.num_programs(2)
    tq = q_ref.shape[3]
    tk = k_ref.shape[3]

    @pl.when(ki == 0)
    def _init():
        m_scr[...] = jnp.full_like(m_scr, -1e30)
        l_scr[...] = jnp.zeros_like(l_scr)
        acc_scr[...] = jnp.zeros_like(acc_scr)

    def attend(apply_mask: bool):
        q = q_ref[0, 0].astype(compute_dtype)                  # (H, tq, d_h)
        k = k_ref[0, 0].astype(compute_dtype)                  # (H, tk, d_h)
        v = v_ref[0, 0].astype(compute_dtype)                  # (H, tk, d_h)

        # Batched over heads, transpose-free Q K^T (contract last dims on MXU).
        # sm_scale is pre-folded into W_Q / b_Q in the wrapper -> no scaling here.
        s = jnp.einsum('hqd,hkd->hqk', q, k,
                       preferred_element_type=jnp.float32)     # (H, tq, tk) f32
        if apply_mask:
            row = qi * tq + lax.broadcasted_iota(jnp.int32, (tq, tk), 0)
            col = ki * tk + lax.broadcasted_iota(jnp.int32, (tq, tk), 1)
            s = jnp.where((col <= row)[None], s, jnp.finfo(jnp.float32).min)

        # Online (flash) softmax update, all in f32.
        m_prev = m_scr[...]
        m_new = jnp.maximum(m_prev, jnp.max(s, axis=-1, keepdims=True))
        alpha = jnp.exp(m_prev - m_new)
        p = jnp.exp(s - m_new)                                  # (H, tq, tk) f32
        l_scr[...] = alpha * l_scr[...] + jnp.sum(p, axis=-1, keepdims=True)
        pv = jnp.einsum('hqk,hkd->hqd', p.astype(compute_dtype), v,
                        preferred_element_type=jnp.float32)
        acc_scr[...] = alpha * acc_scr[...] + pv
        m_scr[...] = m_new

    if is_causal:
        # Block classification: skip fully-above-diagonal blocks entirely; only
        # apply the mask on blocks that actually intersect the diagonal.
        has_unmasked = ki * tk < (qi + 1) * tq        # block has valid entries
        needs_mask = ki * tk + (tk - 1) > qi * tq     # block touches the diagonal
        pl.when(jnp.logical_and(has_unmasked, needs_mask))(lambda: attend(True))
        pl.when(jnp.logical_and(has_unmasked, jnp.logical_not(needs_mask)))(
            lambda: attend(False))
        # TODO(synk): skipped steps still cost ~0.35us grid overhead; a
        # flattened kv grid (scalar-prefetched per-qi kv counts) would remove
        # them for long L.
    else:
        attend(False)

    @pl.when(ki == nk - 1)
    def _finalize():
        approx = compute_dtype != jnp.float32
        attn = acc_scr[...] * pl.reciprocal(l_scr[...], approx=approx)  # (H,tq,d_h)
        n_head = attn.shape[0]
        tq_sz = attn.shape[1]
        d_model = wo_ref.shape[-1]
        # Fused output projection: accumulate per-head (tq,d_h)x(d_h,D) matmuls
        # into a single (tq, D) f32 buffer -> no (H, tq, D) intermediate.
        out = jnp.zeros((tq_sz, d_model), jnp.float32)
        for h in range(n_head):
            out = out + jnp.dot(attn[h].astype(compute_dtype),
                                wo_ref[h].astype(compute_dtype),
                                preferred_element_type=jnp.float32)
        out = out + bo_ref[...]                                  # (tq, D) f32
        # TODO(synk): dropout omitted (inference / p == 0.0) -- identity.
        o_ref[0] = out.astype(o_ref.dtype)


# ---------------------------------------------------------------------------
# Wrapper
# ---------------------------------------------------------------------------
def multi_head_self_attention(x, w_qkv, b_qkv, w_o, b_o, *, n_head: int,
                              is_causal: bool = True,
                              key_padding_mask=None,
                              compute_dtype=jnp.bfloat16,
                              block_m: int = 256, block_q: int = 256,
                              block_k: int = 256,
                              vmem_limit_bytes: int = 64 * 1024 * 1024):
    """x: (B, L, D) f32.  w_qkv: (D, 3D), b_qkv: (1, 3D), w_o: (D, D), b_o: (1, D)."""
    # TODO(synk): key_padding_mask path not implemented (module default is None).
    assert key_padding_mask is None
    B, L, D = x.shape
    assert D % n_head == 0, "d_model must be divisible by n_head"
    d_h = D // n_head

    tm = min(block_m, L)
    tq = min(block_q, L)
    tk = min(block_k, L)
    assert L % tm == 0 and L % tq == 0 and L % tk == 0, "L must divide block sizes"

    sm_scale = 1.0 / math.sqrt(d_h)

    # Weight layout plumbing (free reshapes in the XLA wrapper).  sm_scale is
    # folded into the Q projection weights/bias so the attention kernel never
    # scales the (H, tq, tk) score tensor.  Weights cast to compute dtype so
    # they are stored and DMA'd at half width; biases stay f32.
    scale3 = jnp.array([sm_scale, 1.0, 1.0], jnp.float32).reshape(3, 1, 1)
    w_qkv3 = (w_qkv.reshape(D, 3, D).transpose(1, 0, 2).astype(jnp.float32)
              * scale3).astype(compute_dtype)                            # (3, D, D)
    b_qkv3 = b_qkv.reshape(3, 1, D).astype(jnp.float32) * scale3         # (3, 1, D)
    w_o_h = w_o.reshape(n_head, d_h, D).astype(compute_dtype)            # (H, d_h, D)
    b_o2 = b_o.reshape(1, D).astype(jnp.float32)
    x_c = x.astype(compute_dtype)                                        # halves x DMA

    def build_and_run(single_buffer_weights: bool):
        def wspec(shape, imap):
            # Weight/bias blocks: single-buffer them (their blocks are constant
            # or change only a handful of times) to halve resident weight VMEM.
            if single_buffer_weights:
                return pl.BlockSpec(shape, imap, pipeline_mode=pl.Buffered(1))
            return pl.BlockSpec(shape, imap)

        # --- kernel 1: fused QKV projection -> head-major packed QKV ---
        qkv = pl.pallas_call(
            partial(_qkv_proj_kernel, n_head=n_head, d_h=d_h,
                    compute_dtype=compute_dtype),
            out_shape=jax.ShapeDtypeStruct((3, B, n_head, L, d_h), compute_dtype),
            grid_spec=pltpu.PrefetchScalarGridSpec(
                num_scalar_prefetch=0,
                grid=(3, B, L // tm),   # projection index outermost: 1 slab resident
                in_specs=[
                    pl.BlockSpec((1, tm, D), lambda j, b, i: (b, i, 0)),   # x
                    wspec((1, D, D), lambda j, b, i: (j, 0, 0)),           # W slab
                    wspec((1, 1, D), lambda j, b, i: (j, 0, 0)),           # bias slab
                ],
                out_specs=pl.BlockSpec((1, 1, n_head, tm, d_h),
                                       lambda j, b, i: (j, b, 0, i, 0)),
            ),
            compiler_params=pltpu.CompilerParams(
                dimension_semantics=("parallel", "parallel", "parallel"),
                vmem_limit_bytes=vmem_limit_bytes),
        )(x_c, w_qkv3, b_qkv3)

        # --- kernel 2: flash attention + fused output projection ---
        if is_causal:
            # Clamp K/V block indices so skipped above-diagonal iterations
            # re-request the already-resident block (no new DMA).
            def kv_block(i, j):
                return jnp.minimum(j, ((i + 1) * tq - 1) // tk)
        else:
            def kv_block(i, j):
                return j

        out = pl.pallas_call(
            partial(_flash_attn_kernel, is_causal=is_causal,
                    compute_dtype=compute_dtype),
            out_shape=jax.ShapeDtypeStruct((B, L, D), x.dtype),
            grid_spec=pltpu.PrefetchScalarGridSpec(
                num_scalar_prefetch=0,
                grid=(B, L // tq, L // tk),
                in_specs=[
                    pl.BlockSpec((1, 1, n_head, tq, d_h),
                                 lambda b, i, j: (0, b, 0, i, 0)),              # Q
                    pl.BlockSpec((1, 1, n_head, tk, d_h),
                                 lambda b, i, j: (1, b, 0, kv_block(i, j), 0)),  # K
                    pl.BlockSpec((1, 1, n_head, tk, d_h),
                                 lambda b, i, j: (2, b, 0, kv_block(i, j), 0)),  # V
                    wspec((n_head, d_h, D), lambda b, i, j: (0, 0, 0)),          # W_O
                    wspec((1, D), lambda b, i, j: (0, 0)),                       # b_O
                ],
                out_specs=pl.BlockSpec((1, tq, D), lambda b, i, j: (b, i, 0)),
                scratch_shapes=[
                    pltpu.VMEM((n_head, tq, 1), jnp.float32),    # running max m
                    pltpu.VMEM((n_head, tq, 1), jnp.float32),    # running denom l
                    pltpu.VMEM((n_head, tq, d_h), jnp.float32),  # unnormalized acc
                ],
            ),
            compiler_params=pltpu.CompilerParams(
                dimension_semantics=("parallel", "parallel", "arbitrary"),
                vmem_limit_bytes=vmem_limit_bytes),
        )(qkv, qkv, qkv, w_o_h, b_o2)
        return out

    try:
        return build_and_run(True)
    except Exception:
        # Fallback for JAX versions without BlockSpec(pipeline_mode=Buffered(1)).
        return build_and_run(False)


# ---------------------------------------------------------------------------
# Pure-JAX reference (mirrors the PyTorch module semantics, all f32)
# ---------------------------------------------------------------------------
def _reference(x, w_qkv, b_qkv, w_o, b_o, *, n_head: int, is_causal: bool):
    B, L, D = x.shape
    d_h = D // n_head
    qkv = x @ w_qkv + b_qkv                                   # (B, L, 3D)
    q, k, v = jnp.split(qkv, 3, axis=-1)

    def heads(t):                                             # (B,L,D)->(B,H,L,d_h)
        return t.reshape(B, L, n_head, d_h).transpose(0, 2, 1, 3)

    q, k, v = heads(q), heads(k), heads(v)
    s = jnp.einsum("bhqd,bhkd->bhqk", q, k) / math.sqrt(d_h)
    if is_causal:
        keep = jnp.tril(jnp.ones((L, L), dtype=bool))
        s = jnp.where(keep[None, None], s, jnp.finfo(s.dtype).min)
    p = jax.nn.softmax(s, axis=-1)
    o = jnp.einsum("bhqk,bhkd->bhqd", p, v)
    o = o.transpose(0, 2, 1, 3).reshape(B, L, D)
    return o @ w_o + b_o


if __name__ == "__main__":
    B, L, D, H = 2, 8, 32, 4
    key = jax.random.PRNGKey(0)
    k_x, k_wqkv, k_bqkv, k_wo, k_bo = jax.random.split(key, 5)

    bound = 1.0 / math.sqrt(D)
    x = jax.random.normal(k_x, (B, L, D), dtype=jnp.float32)
    w_qkv = jax.random.uniform(k_wqkv, (D, 3 * D), jnp.float32, -bound, bound)
    b_qkv = jax.random.uniform(k_bqkv, (1, 3 * D), jnp.float32, -bound, bound)
    w_o = jax.random.uniform(k_wo, (D, D), jnp.float32, -bound, bound)
    b_o = jax.random.uniform(k_bo, (1, D), jnp.float32, -bound, bound)

    ref = _reference(x, w_qkv, b_qkv, w_o, b_o, n_head=H, is_causal=True)

    # Exact-precision path (f32 MXU matmuls) -- strict algorithm check.
    out_f32 = multi_head_self_attention(x, w_qkv, b_qkv, w_o, b_o, n_head=H,
                                        is_causal=True,
                                        compute_dtype=jnp.float32)
    out_f32 = jax.block_until_ready(out_f32)
    assert out_f32.shape == (B, L, D)
    assert jnp.allclose(out_f32, ref, atol=1e-5, rtol=1e-5), "f32 mismatch vs reference"

    # Performance path (bf16 MXU matmuls, f32 accumulation / f32 softmax).
    out_bf16 = multi_head_self_attention(x, w_qkv, b_qkv, w_o, b_o, n_head=H,
                                         is_causal=True,
                                         compute_dtype=jnp.bfloat16)
    out_bf16 = jax.block_until_ready(out_bf16)
    assert jnp.allclose(out_bf16, ref, atol=5e-2, rtol=5e-2), "bf16 mismatch vs reference"

    print("KERNEL_OK")
</pallas_src>

<mosaic_0001>
module attributes {stable_mosaic.version = 11 : i64} {
  func.func @_qkv_proj_kernel(%arg0: i32, %arg1: i32, %arg2: i32, %arg3: memref<1x8x32xf32, #tpu.memory_space<vmem>>, %arg4: memref<1x32x32xf32, #tpu.memory_space<vmem>>, %arg5: memref<1x1x32xf32, #tpu.memory_space<vmem>>, %arg6: memref<1x1x4x8x8xf32, #tpu.memory_space<vmem>>) attributes {dimension_semantics = [#tpu.dimension_semantics<parallel>, #tpu.dimension_semantics<parallel>, #tpu.dimension_semantics<parallel>], iteration_bounds = array<i64: 3, 2, 1>, scalar_prefetch = 0 : i64, scratch_operands = 0 : i64, tpu.core_type = #tpu.core_type<tc>, window_params = [{transform_indices = @transform_0, window_bounds = array<i64: 1, 8, 32>}, {pipeline_mode = #tpu.pipeline_mode<synchronous>, transform_indices = @transform_1, window_bounds = array<i64: 1, 32, 32>}, {pipeline_mode = #tpu.pipeline_mode<synchronous>, transform_indices = @transform_2, window_bounds = array<i64: 1, 1, 32>}, {transform_indices = @transform_3, window_bounds = array<i64: 1, 1, 4, 8, 8>}]} {
    %c0 = arith.constant 0 : index
    %c0_0 = arith.constant 0 : index
    %c0_1 = arith.constant 0 : index
    %0 = vector.load %arg3[%c0, %c0_0, %c0_1] : memref<1x8x32xf32, #tpu.memory_space<vmem>>, vector<1x8x32xf32>
    %1 = vector.shape_cast %0 : vector<1x8x32xf32> to vector<8x32xf32>
    %c0_2 = arith.constant 0 : index
    %c0_3 = arith.constant 0 : index
    %c0_4 = arith.constant 0 : index
    %2 = vector.load %arg4[%c0_2, %c0_3, %c0_4] : memref<1x32x32xf32, #tpu.memory_space<vmem>>, vector<1x32x32xf32>
    %3 = vector.shape_cast %2 : vector<1x32x32xf32> to vector<32x32xf32>
    %cst = arith.constant dense<0.000000e+00> : vector<8x32xf32>
    %4 = tpu.matmul %1, %3, %cst {dimension_numbers = #tpu.dot_dimension_numbers<[1], [0], [0], [1], [0, 0, 1, 1], [], []>} : vector<8x32xf32>, vector<32x32xf32>, vector<8x32xf32> -> vector<8x32xf32>
    %c0_5 = arith.constant 0 : index
    %c0_6 = arith.constant 0 : index
    %c0_7 = arith.constant 0 : index
    %5 = vector.load %arg5[%c0_5, %c0_6, %c0_7] : memref<1x1x32xf32, #tpu.memory_space<vmem>>, vector<1x1x32xf32>
    %6 = vector.shape_cast %5 : vector<1x1x32xf32> to vector<1x32xf32>
    %7 = vector.broadcast %6 : vector<1x32xf32> to vector<8x32xf32>
    %8 = arith.addf %4, %7 : vector<8x32xf32>
    %9 = vector.extract_strided_slice %8 {offsets = [0, 0], sizes = [8, 8], strides = [1, 1]} : vector<8x32xf32> to vector<8x8xf32>
    %c0_8 = arith.constant 0 : index
    %c0_9 = arith.constant 0 : index
    %c0_10 = arith.constant 0 : index
    %c0_11 = arith.constant 0 : index
    %c0_12 = arith.constant 0 : index
    %10 = vector.load %arg6[%c0_8, %c0_9, %c0_10, %c0_11, %c0_12] : memref<1x1x4x8x8xf32, #tpu.memory_space<vmem>>, vector<1x1x1x8x8xf32>
    %11 = vector.shape_cast %10 : vector<1x1x1x8x8xf32> to vector<8x8xf32>
    %12 = vector.shape_cast %9 : vector<8x8xf32> to vector<1x1x1x8x8xf32>
    tpu.vector_store %arg6[%c0_8, %c0_9, %c0_10, %c0_11, %c0_12], %12 {strides = array<i32>} : memref<1x1x4x8x8xf32, #tpu.memory_space<vmem>>, vector<1x1x1x8x8xf32>,
    %13 = vector.extract_strided_slice %8 {offsets = [0, 8], sizes = [8, 8], strides = [1, 1]} : vector<8x32xf32> to vector<8x8xf32>
    %c0_13 = arith.constant 0 : index
    %c0_14 = arith.constant 0 : index
    %c1 = arith.constant 1 : index
    %c0_15 = arith.constant 0 : index
    %c0_16 = arith.constant 0 : index
    %14 = vector.load %arg6[%c0_13, %c0_14, %c1, %c0_15, %c0_16] : memref<1x1x4x8x8xf32, #tpu.memory_space<vmem>>, vector<1x1x1x8x8xf32>
    %15 = vector.shape_cast %14 : vector<1x1x1x8x8xf32> to vector<8x8xf32>
    %16 = vector.shape_cast %13 : vector<8x8xf32> to vector<1x1x1x8x8xf32>
    tpu.vector_store %arg6[%c0_13, %c0_14, %c1, %c0_15, %c0_16], %16 {strides = array<i32>} : memref<1x1x4x8x8xf32, #tpu.memory_space<vmem>>, vector<1x1x1x8x8xf32>,
    %17 = vector.extract_strided_slice %8 {offsets = [0, 16], sizes = [8, 8], strides = [1, 1]} : vector<8x32xf32> to vector<8x8xf32>
    %c0_17 = arith.constant 0 : index
    %c0_18 = arith.constant 0 : index
    %c2 = arith.constant 2 : index
    %c0_19 = arith.constant 0 : index
    %c0_20 = arith.constant 0 : index
    %18 = vector.load %arg6[%c0_17, %c0_18, %c2, %c0_19, %c0_20] : memref<1x1x4x8x8xf32, #tpu.memory_space<vmem>>, vector<1x1x1x8x8xf32>
    %19 = vector.shape_cast %18 : vector<1x1x1x8x8xf32> to vector<8x8xf32>
    %20 = vector.shape_cast %17 : vector<8x8xf32> to vector<1x1x1x8x8xf32>
    tpu.vector_store %arg6[%c0_17, %c0_18, %c2, %c0_19, %c0_20], %20 {strides = array<i32>} : memref<1x1x4x8x8xf32, #tpu.memory_space<vmem>>, vector<1x1x1x8x8xf32>,
    %21 = vector.extract_strided_slice %8 {offsets = [0, 24], sizes = [8, 8], strides = [1, 1]} : vector<8x32xf32> to vector<8x8xf32>
    %c0_21 = arith.constant 0 : index
    %c0_22 = arith.constant 0 : index
    %c3 = arith.constant 3 : index
    %c0_23 = arith.constant 0 : index
    %c0_24 = arith.constant 0 : index
    %22 = vector.load %arg6[%c0_21, %c0_22, %c3, %c0_23, %c0_24] : memref<1x1x4x8x8xf32, #tpu.memory_space<vmem>>, vector<1x1x1x8x8xf32>
    %23 = vector.shape_cast %22 : vector<1x1x1x8x8xf32> to vector<8x8xf32>
    %24 = vector.shape_cast %21 : vector<8x8xf32> to vector<1x1x1x8x8xf32>
    tpu.vector_store %arg6[%c0_21, %c0_22, %c3, %c0_23, %c0_24], %24 {strides = array<i32>} : memref<1x1x4x8x8xf32, #tpu.memory_space<vmem>>, vector<1x1x1x8x8xf32>,
    return
  }
  func.func @transform_0(%arg0: i32, %arg1: i32, %arg2: i32) -> (i32, i32, i32) {
    %c0_i32 = arith.constant 0 : i32
    %c0_i32_0 = arith.constant 0 : i32
    return %arg1, %arg2, %c0_i32 : i32, i32, i32
  }
  func.func @transform_1(%arg0: i32, %arg1: i32, %arg2: i32) -> (i32, i32, i32) {
    %c0_i32 = arith.constant 0 : i32
    %c0_i32_0 = arith.constant 0 : i32
    %c0_i32_1 = arith.constant 0 : i32
    return %arg0, %c0_i32, %c0_i32_0 : i32, i32, i32
  }
  func.func @transform_2(%arg0: i32, %arg1: i32, %arg2: i32) -> (i32, i32, i32) {
    %c0_i32 = arith.constant 0 : i32
    %c0_i32_0 = arith.constant 0 : i32
    %c0_i32_1 = arith.constant 0 : i32
    return %arg0, %c0_i32, %c0_i32_0 : i32, i32, i32
  }
  func.func @transform_3(%arg0: i32, %arg1: i32, %arg2: i32) -> (i32, i32, i32, i32, i32) {
    %c0_i32 = arith.constant 0 : i32
    %c0_i32_0 = arith.constant 0 : i32
    %c0_i32_1 = arith.constant 0 : i32
    return %arg0, %arg1, %c0_i32, %arg2, %c0_i32_0 : i32, i32, i32, i32, i32
  }
}

module attributes {stable_mosaic.version = 11 : i64} {
  func.func @_qkv_proj_kernel(%arg0: i32, %arg1: i32, %arg2: i32, %arg3: memref<1x8x32xf32, #tpu.memory_space<vmem>>, %arg4: memref<1x32x32xf32, #tpu.memory_space<vmem>>, %arg5: memref<1x1x32xf32, #tpu.memory_space<vmem>>, %arg6: memref<1x1x4x8x8xf32, #tpu.memory_space<vmem>>) attributes {dimension_semantics = [#tpu.dimension_semantics<parallel>, #tpu.dimension_semantics<parallel>, #tpu.dimension_semantics<parallel>], iteration_bounds = array<i64: 3, 2, 1>, scalar_prefetch = 0 : i64, scratch_operands = 0 : i64, tpu.core_type = #tpu.core_type<tc>, window_params = [{transform_indices = @transform_0, window_bounds = array<i64: 1, 8, 32>}, {transform_indices = @transform_1, window_bounds = array<i64: 1, 32, 32>}, {transform_indices = @transform_2, window_bounds = array<i64: 1, 1, 32>}, {transform_indices = @transform_3, window_bounds = array<i64: 1, 1, 4, 8, 8>}]} {
    %c0 = arith.constant 0 : index
    %c0_0 = arith.constant 0 : index
    %c0_1 = arith.constant 0 : index
    %0 = vector.load %arg3[%c0, %c0_0, %c0_1] : memref<1x8x32xf32, #tpu.memory_space<vmem>>, vector<1x8x32xf32>
    %1 = vector.shape_cast %0 : vector<1x8x32xf32> to vector<8x32xf32>
    %c0_2 = arith.constant 0 : index
    %c0_3 = arith.constant 0 : index
    %c0_4 = arith.constant 0 : index
    %2 = vector.load %arg4[%c0_2, %c0_3, %c0_4] : memref<1x32x32xf32, #tpu.memory_space<vmem>>, vector<1x32x32xf32>
    %3 = vector.shape_cast %2 : vector<1x32x32xf32> to vector<32x32xf32>
    %cst = arith.constant dense<0.000000e+00> : vector<8x32xf32>
    %4 = tpu.matmul %1, %3, %cst {dimension_numbers = #tpu.dot_dimension_numbers<[1], [0], [0], [1], [0, 0, 1, 1], [], []>} : vector<8x32xf32>, vector<32x32xf32>, vector<8x32xf32> -> vector<8x32xf32>
    %c0_5 = arith.constant 0 : index
    %c0_6 = arith.constant 0 : index
    %c0_7 = arith.constant 0 : index
    %5 = vector.load %arg5[%c0_5, %c0_6, %c0_7] : memref<1x1x32xf32, #tpu.memory_space<vmem>>, vector<1x1x32xf32>
    %6 = vector.shape_cast %5 : vector<1x1x32xf32> to vector<1x32xf32>
    %7 = vector.broadcast %6 : vector<1x32xf32> to vector<8x32xf32>
    %8 = arith.addf %4, %7 : vector<8x32xf32>
    %9 = vector.extract_strided_slice %8 {offsets = [0, 0], sizes = [8, 8], strides = [1, 1]} : vector<8x32xf32> to vector<8x8xf32>
    %c0_8 = arith.constant 0 : index
    %c0_9 = arith.constant 0 : index
    %c0_10 = arith.constant 0 : index
    %c0_11 = arith.constant 0 : index
    %c0_12 = arith.constant 0 : index
    %10 = vector.load %arg6[%c0_8, %c0_9, %c0_10, %c0_11, %c0_12] : memref<1x1x4x8x8xf32, #tpu.memory_space<vmem>>, vector<1x1x1x8x8xf32>
    %11 = vector.shape_cast %10 : vector<1x1x1x8x8xf32> to vector<8x8xf32>
    %12 = vector.shape_cast %9 : vector<8x8xf32> to vector<1x1x1x8x8xf32>
    tpu.vector_store %arg6[%c0_8, %c0_9, %c0_10, %c0_11, %c0_12], %12 {strides = array<i32>} : memref<1x1x4x8x8xf32, #tpu.memory_space<vmem>>, vector<1x1x1x8x8xf32>,
    %13 = vector.extract_strided_slice %8 {offsets = [0, 8], sizes = [8, 8], strides = [1, 1]} : vector<8x32xf32> to vector<8x8xf32>
    %c0_13 = arith.constant 0 : index
    %c0_14 = arith.constant 0 : index
    %c1 = arith.constant 1 : index
    %c0_15 = arith.constant 0 : index
    %c0_16 = arith.constant 0 : index
    %14 = vector.load %arg6[%c0_13, %c0_14, %c1, %c0_15, %c0_16] : memref<1x1x4x8x8xf32, #tpu.memory_space<vmem>>, vector<1x1x1x8x8xf32>
    %15 = vector.shape_cast %14 : vector<1x1x1x8x8xf32> to vector<8x8xf32>
    %16 = vector.shape_cast %13 : vector<8x8xf32> to vector<1x1x1x8x8xf32>
    tpu.vector_store %arg6[%c0_13, %c0_14, %c1, %c0_15, %c0_16], %16 {strides = array<i32>} : memref<1x1x4x8x8xf32, #tpu.memory_space<vmem>>, vector<1x1x1x8x8xf32>,
    %17 = vector.extract_strided_slice %8 {offsets = [0, 16], sizes = [8, 8], strides = [1, 1]} : vector<8x32xf32> to vector<8x8xf32>
    %c0_17 = arith.constant 0 : index
    %c0_18 = arith.constant 0 : index
    %c2 = arith.constant 2 : index
    %c0_19 = arith.constant 0 : index
    %c0_20 = arith.constant 0 : index
    %18 = vector.load %arg6[%c0_17, %c0_18, %c2, %c0_19, %c0_20] : memref<1x1x4x8x8xf32, #tpu.memory_space<vmem>>, vector<1x1x1x8x8xf32>
    %19 = vector.shape_cast %18 : vector<1x1x1x8x8xf32> to vector<8x8xf32>
    %20 = vector.shape_cast %17 : vector<8x8xf32> to vector<1x1x1x8x8xf32>
    tpu.vector_store %arg6[%c0_17, %c0_18, %c2, %c0_19, %c0_20], %20 {strides = array<i32>} : memref<1x1x4x8x8xf32, #tpu.memory_space<vmem>>, vector<1x1x1x8x8xf32>,
    %21 = vector.extract_strided_slice %8 {offsets = [0, 24], sizes = [8, 8], strides = [1, 1]} : vector<8x32xf32> to vector<8x8xf32>
    %c0_21 = arith.constant 0 : index
    %c0_22 = arith.constant 0 : index
    %c3 = arith.constant 3 : index
    %c0_23 = arith.constant 0 : index
    %c0_24 = arith.constant 0 : index
    %22 = vector.load %arg6[%c0_21, %c0_22, %c3, %c0_23, %c0_24] : memref<1x1x4x8x8xf32, #tpu.memory_space<vmem>>, vector<1x1x1x8x8xf32>
    %23 = vector.shape_cast %22 : vector<1x1x1x8x8xf32> to vector<8x8xf32>
    %24 = vector.shape_cast %21 : vector<8x8xf32> to vector<1x1x1x8x8xf32>
    tpu.vector_store %arg6[%c0_21, %c0_22, %c3, %c0_23, %c0_24], %24 {strides = array<i32>} : memref<1x1x4x8x8xf32, #tpu.memory_space<vmem>>, vector<1x1x1x8x8xf32>,
    return
  }
  func.func @transform_0(%arg0: i32, %arg1: i32, %arg2: i32) -> (i32, i32, i32) {
    %c0_i32 = arith.constant 0 : i32
    %c0_i32_0 = arith.constant 0 : i32
    return %arg1, %arg2, %c0_i32 : i32, i32, i32
  }
  func.func @transform_1(%arg0: i32, %arg1: i32, %arg2: i32) -> (i32, i32, i32) {
    %c0_i32 = arith.constant 0 : i32
    %c0_i32_0 = arith.constant 0 : i32
    %c0_i32_1 = arith.constant 0 : i32
    return %arg0, %c0_i32, %c0_i32_0 : i32, i32, i32
  }
  func.func @transform_2(%arg0: i32, %arg1: i32, %arg2: i32) -> (i32, i32, i32) {
    %c0_i32 = arith.constant 0 : i32
    %c0_i32_0 = arith.constant 0 : i32
    %c0_i32_1 = arith.constant 0 : i32
    return %arg0, %c0_i32, %c0_i32_0 : i32, i32, i32
  }
  func.func @transform_3(%arg0: i32, %arg1: i32, %arg2: i32) -> (i32, i32, i32, i32, i32) {
    %c0_i32 = arith.constant 0 : i32
    %c0_i32_0 = arith.constant 0 : i32
    %c0_i32_1 = arith.constant 0 : i32
    return %arg0, %arg1, %c0_i32, %arg2, %c0_i32_0 : i32, i32, i32, i32, i32
  }
}

</mosaic_0001>

<bundles_post_ra>
// kernel: tpu_custom_call.1
= control target key start
LH: loop header
LB: loop body
LE: loop exit
PB: predicated region body
PF: predicated region fallthrough
CT: control target
= control target key end

     0   :  { %s1313_s0 = inlined_call_operand.hbm [shape: f32[2,8,32], index: 0, kind: input, shape index: {}]   ;;  %s1314_s1 = inlined_call_operand.hbm [shape: f32[3,32,32], index: 1, kind: input, shape index: {}]   ;;  %s1315_s2 = inlined_call_operand.hbm [shape: f32[3,1,32], index: 2, kind: input, shape index: {}]   ;;  %s1316_s3 = inlined_call_operand.hbm [shape: f32[3,2,4,8,8], index: 3, kind: output, shape index: {}]  }
   0x1   :  { %1326 = sst [smem:[#allocation16_spill]] %s1314_s1 }
   0x2   :  { %1327 = sst [smem:[#allocation17_spill]] %s1315_s2 }
   0x3   :  { %1328 = sst [smem:[#allocation18_spill]] %s1316_s3 }
   0x4   :  { %8 = vsyncpa [#allocation3], 0 }
   0x5   :  { %10 = vsyncpa [#allocation3 + $0x1], 0 }
   0x6   :  { %11 = vsyncpa [#allocation6], 0 }
   0x7   :  { %12 = vsyncpa [#allocation4], 0 }
   0x8   :  { %14 = vsyncpa [#allocation4 + $0x1], 0  ;;  %s961_s12 = smov 0   ;;  %s963_s13 = smov 0  }
   0x9   :  { %s965_s14 = smov 0   ;;  %s967_s15 = smov 0  }
   0xa   :  { %s969_s16 = smov 0   ;;  %s971_s17 = smov 0  }
   0xb   :  { %s973_s18 = smov 0   ;;  %s975_s19 = smov 0  }
   0xc   :  { %s977_s20 = smov 0   ;;  %s979_s21 = smov 0  }
   0xd   :  { %s981_s22 = smov 0   ;;  %s983_s23 = smov 0  }
   0xe   :  { %s985_s24 = smov 0   ;;  %s987_s25 = smov 0  }
   0xf LB: > { %1329 = sst [smem:[#allocation12_spill]] %s889_s16  ;;  %s490_s26 = sadd.s32 4294967295, %s925_s25   ;;  %s925_s25 = sphi %s987_s25, %s20_s25   ;;  %s921_s24 = sphi %s985_s24, %s1370_s24   ;;  %s917_s23 = sphi %s983_s23, %s1369_s23   ;;  %s913_s22 = sphi %s981_s22, %s1368_s22   ;;  %s909_s21 = sphi %s979_s21, %s1367_s21   ;;  %s905_s20 = sphi %s977_s20, %s1366_s20   ;;  %s901_s19 = sphi %s975_s19, %s1365_s19   ;;  %s897_s18 = sphi %s973_s18, %s1364_s18   ;;  %s893_s17 = sphi %s971_s17, %s1363_s17   ;;  %s889_s16 = sphi %s969_s16, %s1362_s16   ;;  %s885_s15 = sphi %s967_s15, %s1361_s15   ;;  %s881_s14 = sphi %s965_s14, %s1360_s14   ;;  %s877_s13 = sphi %s963_s13, %s1359_s13   ;;  %s873_s12 = sphi %s961_s12, %s1358_s12  }
  0x10   : > { %1330 = sst [smem:[#allocation13_spill]] %s909_s21  ;;  %p87_p0 = scmp.ne.s32.totalorder %s889_s16, %s885_s15 }
  0x11   : > { %p1031_p1 = scmp.eq.s32.totalorder %s490_s26, 0  ;;  %p1035_p2 = scmp.eq.s32.totalorder %s490_s26, 5 }
  0x12   : > { %p492_p3 = scmp.ge.s32.totalorder %s925_s25, 1  ;;  %p154_p4 = scmp.lt.s32.totalorder %s925_s25, 7 }
  0x13   : > { %s1331_s27 = scalar_select %p1031_p1, 1, 0 }
  0x14   : > { %s1332_s28 = scalar_select %p1035_p2, 1, 0 }
  0x15   : > { %p1043_p5 = por %p87_p0, %p1031_p1  ;;  %s513_s30 = sshll.u32 %s913_s22, 9 }
  0x16   : > { %p1048_p6 = pnand %p492_p3, %p154_p4  ;;  %s1335_s1 = sld [smem:[#allocation16_spill]] }
  0x17   : > { %s1333_s29 = scalar_select %p1043_p5, 1, 0 }
  0x18   : > { %s1334_s4 = scalar_select %p1048_p6, 1, 0 }
  0x19   : > { %p544_p7 = pneg %p1048_p6  ;;  %s927_s8 = smov [#allocation5]  }
  0x1a   : > { %s169_s9 = sshll.u32 %s927_s8, 4  ;;  %s495_s11 = sshll.u32 %s913_s22, 4  ;;  %s1059_s9 = int_to_ptr.vmem [resolvable:$true] %s169_s9 }
  0x1b   : > { %p1063_p8 = pnand %p544_p7, %p1043_p5  ;;  %s1337_s2 = sld [smem:[#allocation17_spill]] }
  0x1c   : > { %s1055_s7 = scalar_lea.hbm %s1335_s1, %s513_s30  ;;  %s690_s16 = scalar_lea.hbm %s1335_s1, 1536 }
  0x1d   : > { %s685_s5 = scalar_lea.hbm %s1055_s7, 512  ;;  %p687_p10 = pneg %p1063_p8 }
  0x1e   : > { %p686_p9 = scmp.ne.s32.totalorder %s1055_s7, %s685_s5  ;;  %p691_p13 = scmp.lt.u32.totalorder %s1055_s7, %s1335_s1 }
  0x1f   : > { %p692_p0 = scmp.lt.u32.totalorder %s690_s16, %s685_s5  ;;  %p694_p4 = scmp.lt.u32.totalorder %s685_s5, %s1055_s7 }
  0x20   : > { %p688_p11 = pnand %p687_p10, %p686_p9 }
  0x21   : > { %s1071_s30 = scalar_lea.hbm %s1337_s2, %s495_s11  ;;  %p693_p3 = por %p692_p0, %p691_p13 }
  0x22   : > { %p689_p12 = pneg %p688_p11 }
  0x23   : > { %p695_p7 = por %p694_p4, %p693_p3 }
  0x25   : > { %p696_p5 = pnand %p695_p7, %p689_p12 }
  0x27   : > { %699 = shalt.err (!%p696_p5)
}
  0x28   : > { %s700_s11 = scalar_lea.vmem %s1059_s9, 512  ;;  %p708_p2 = scmp.lt.s32.totalorder %s1059_s9, %s1059_s9 }
  0x29   : > { %p701_p9 = scmp.ne.s32.totalorder %s1059_s9, %s700_s11  ;;  %p709_p1 = scmp.lt.s32.totalorder %s700_s11, %s700_s11 }
  0x2b   : > { %p703_p11 = pnand %p701_p9, %p687_p10  ;;  %p710_p0 = por %p709_p1, %p708_p2 }
  0x2d   : > { %p704_p6 = pneg %p703_p11 }
  0x2f   : > { %p711_p13 = pnand %p710_p0, %p704_p6 }
  0x31   : > { %714 = shalt.err (!%p711_p13)
}
  0x32   : > { %s928_s3 = smov 128   ;;  %s929_s16 = smov 8  }
  0x33   : > { %547 = dma.hbm_to_vmem [thread:$0]  (!%p1063_p8), %s1055_s7, 512, %s1059_s9, [#allocation6], %s928_s3, %s928_s3, %s929_s16  }
  0x34   : > { %s930_s21 = smov [#allocation7]   ;;  %s715_s26 = scalar_lea.hbm %s1071_s30, 16 }
  0x35   : > { %s185_s15 = sshll.u32 %s930_s21, 4  ;;  %p716_p5 = scmp.ne.s32.totalorder %s1071_s30, %s715_s26  ;;  %s186_s15 = int_to_ptr.vmem [resolvable:$true] %s185_s15 }
  0x36   : > { %s720_s8 = scalar_lea.hbm %s1337_s2, 48  ;;  %p721_p6 = scmp.lt.u32.totalorder %s1071_s30, %s1337_s2 }
  0x37   : > { %p718_p1 = pnand %p716_p5, %p687_p10  ;;  %p722_p12 = scmp.lt.u32.totalorder %s720_s8, %s715_s26 }
  0x38   : > { %p724_p4 = scmp.lt.u32.totalorder %s715_s26, %s1071_s30 }
  0x39   : > { %p719_p2 = pneg %p718_p1  ;;  %p723_p3 = por %p722_p12, %p721_p6 }
  0x3b   : > { %p725_p7 = por %p724_p4, %p723_p3 }
  0x3d   : > { %p726_p9 = pnand %p725_p7, %p719_p2 }
  0x3f   : > { %729 = shalt.err (!%p726_p9)
}
  0x40   : > { %s730_s7 = scalar_lea.vmem %s186_s15, 16  ;;  %s737_s9 = scalar_lea.vmem %s186_s15, 32 }
  0x41   : > { %p731_p11 = scmp.ne.s32.totalorder %s186_s15, %s730_s7  ;;  %p738_p5 = scmp.lt.s32.totalorder %s186_s15, %s186_s15 }
  0x42   : > { %p739_p1 = scmp.lt.s32.totalorder %s737_s9, %s730_s7 }
  0x43   : > { %p733_p0 = pnand %p731_p11, %p687_p10 }
  0x44   : > { %p740_p6 = por %p739_p1, %p738_p5 }
  0x45   : > { %p734_p13 = pneg %p733_p0 }
  0x47   : > { %p741_p12 = pnand %p740_p6, %p734_p13 }
  0x49   : > { %744 = shalt.err (!%p741_p12)
}
  0x4a   : > { %550 = dma.hbm_to_vmem [thread:$0]  (!%p1063_p8), %s1071_s30, 16, %s186_s15, [#allocation6]  }
  0x4b   : > { %s491_s1 = sadd.s32 4294967294, %s925_s25   ;;  %s35_s3 = sadd.s32 1, %s917_s23 }
  0x4c   : > { %p37_p10 = scmp.ge.s32.totalorder %s35_s3, 2  ;;  %s39_s10 = sadd.s32 1, %s921_s24 }
  0x4d   : > { %s48_s16 = sadd.s32 1, %s905_s20  ;;  %p55_p2 = scmp.ne.s32.totalorder %s905_s20, %s901_s19 }
  0x4e   : > { %s1372_s3 = smov (%p37_p10, %s35_s3), 0  ;;  %s1374_s10 = smov (!%p37_p10, %s39_s10), %s921_s24 }
  0x4f   : > { %1338 = sst [smem:[#allocation14_spill]] %s1372_s3  ;;  %s43_s21 = ssub.s32 %s917_s23, %s1372_s3 }
  0x50   : > { %p56_p8 = scmp.eq.s32.totalorder %s925_s25, 0  ;;  %p41_p3 = scmp.ge.s32.totalorder %s1374_s10, 3 }
  0x51   : > { %p46_p4 = scmp.eq.s32.totalorder %s43_s21, 0  ;;  %p61_p9 = scmp.ne.s32.totalorder %s901_s19, %s897_s18 }
  0x52   : > { %p1130_p7 = por %p56_p8, %p55_p2  ;;  %s1376_s10 = smov (%p41_p3, %s1374_s10), 0 }
  0x53   : > { %1340 = sst [smem:[#allocation15_spill]] %s1376_s10  ;;  %p1341_p11 = scmp.ne.s32.totalorder %s1331_s27, 0 }
  0x54   : > { %s1139_s15 = scalar_select %p46_p4, %s905_s20, %s48_s16  }
  0x55   : > { %p1143_p0 = por %p1341_p11, %p61_p9  ;;  %s71_s5 = ssub.s32 %s921_s24, %s1376_s10 }
  0x56   : > { %p72_p13 = scmp.eq.s32.totalorder %s71_s5, 0  ;;  %s74_s6 = sadd.s32 1, %s893_s17 }
  0x57   : > { %s125_s8 = sor.u32 %s71_s5, %s43_s21  ;;  %s130_s11 = sadd.s32 1, %s881_s14 }
  0x58   : > { %s1152_s7 = scalar_select %p72_p13, %s893_s17, %s74_s6  }
  0x59   : > { %p128_p5 = scmp.eq.s32.totalorder %s125_s8, 0  ;;  %p140_p1 = scmp.ne.s32.totalorder %s881_s14, %s877_s13 }
  0x5a   : > { %p146_p6 = scmp.ne.s32.totalorder %s877_s13, %s873_s12  ;;  %p147_p12 = scmp.eq.s32.totalorder %s491_s1, 5 }
  0x5b   : > { %s1159_s18 = scalar_select %p128_p5, %s881_s14, %s130_s11  }
  0x5c   : > { %p1343_p10 = scmp.ne.s32.totalorder %s1332_s28, 0  ;;  %p1167_p8 = por %p147_p12, %p146_p6 }
  0x5d   : > { %p559_p3 = scmp.lt.s32.totalorder %s925_s25, 6  ;;  %s196_s16 = sand.u32 1, %s905_s20  }
  0x5e   : > { %p1163_p2 = por %p1343_p10, %p140_p1  ;;  %s497_s21 = sshll.u32 %s196_s16, 3 }
  0x5f   : > { %s1345_s9 = scalar_select %p1167_p8, 1, 0 }
  0x60   : > { %s1344_s27 = scalar_select %p1163_p2, 1, 0 }
  0x61   : > { %s498_s5 = sshll.u32 %s917_s23, 7  ;;  %s200_s28 = scalar_lea.vmem [#allocation2], %s497_s21 }
  0x62   : > { %s1177_s2 = scalar_lea.hbm %s1313_s0, %s498_s5  ;;  %s208_s1 = sshll.u32 %s200_s28, 4  ;;  %s1179_s1 = int_to_ptr.vmem [resolvable:$true] %s208_s1 }
  0x63   : > { %p1183_p4 = pnand %p559_p3, %p1130_p7  ;;  %s197_s10 = scalar_lea.sflag [#allocation3], %s196_s16 }
  0x64   : > { %s745_s3 = scalar_lea.hbm %s1177_s2, 128  ;;  %s750_s6 = scalar_lea.hbm %s1313_s0, 256 }
  0x65   : > { %p746_p9 = scmp.ne.s32.totalorder %s1177_s2, %s745_s3  ;;  %p747_p11 = pneg %p1183_p4 }
  0x66   : > { %p751_p7 = scmp.lt.u32.totalorder %s1177_s2, %s1313_s0  ;;  %p752_p1 = scmp.lt.u32.totalorder %s750_s6, %s745_s3 }
  0x67   : > { %p748_p13 = pnand %p747_p11, %p746_p9  ;;  %p754_p12 = scmp.lt.u32.totalorder %s745_s3, %s1177_s2 }
  0x68   : > { %p753_p6 = por %p752_p1, %p751_p7 }
  0x69   : > { %p749_p5 = pneg %p748_p13 }
  0x6a   : > { %p755_p10 = por %p754_p12, %p753_p6 }
  0x6c   : > { %p756_p3 = pnand %p755_p10, %p749_p5 }
  0x6e   : > { %759 = shalt.err (!%p756_p3)
}
  0x6f   : > { %s760_s16 = scalar_lea.vmem %s1179_s1, 128  ;;  %s931_s28 = smov [#allocation2]  }
  0x70   : > { %p761_p9 = scmp.ne.s32.totalorder %s1179_s1, %s760_s16  ;;  %s765_s21 = sshll.u32 %s931_s28, 4  ;;  %s766_s21 = int_to_ptr.vmem [resolvable:$false] %s765_s21 }
  0x71   : > { %s767_s5 = scalar_lea.vmem %s766_s21, 256  ;;  %p768_p2 = scmp.lt.s32.totalorder %s1179_s1, %s766_s21 }
  0x72   : > { %p763_p13 = pnand %p761_p9, %p747_p11  ;;  %p769_p7 = scmp.lt.s32.totalorder %s767_s5, %s760_s16 }
  0x74   : > { %p764_p8 = pneg %p763_p13  ;;  %p770_p1 = por %p769_p7, %p768_p2 }
  0x76   : > { %p771_p6 = pnand %p770_p1, %p764_p8 }
  0x78   : > { %774 = shalt.err (!%p771_p6)
}
  0x79   : > { %554 = dma.hbm_to_vmem [thread:$0]  (!%p1183_p4), %s1177_s2, 128, %s1179_s1, %s197_s10  }
  0x7a   : > { %p1347_p5 = scmp.ne.s32.totalorder %s1334_s4, 0 }
  0x7b   : > { %s219_s3 = sand.u32 (!%p1347_p5), 1, %s901_s19  }
  0x7c   : > { %217 = sbr.rel (%p1347_p5) target bundleno = 494 (0x1ee), region = 32  ;;  %s500_s6 = sshll.u32 (!%p1347_p5), %s219_s3, 3 }
  0x7d   : > { %s220_s30 = scalar_lea.sflag (!%p1347_p5), [#allocation3], %s219_s3  ;;  %s223_s8 = scalar_lea.vmem (!%p1347_p5), [#allocation2], %s500_s6 }
  0x83   : > { %860 = dma.done.wait (%p1143_p0), %s220_s30, 128  }
  0x84   : > { %862 = vsyncadd (%p1143_p0), %s220_s30, 4294967168  ;;  %p1348_p2 = scmp.ne.s32.totalorder %s1333_s29, 0 }
  0x86   : > { %864 = dma.done.wait (%p1348_p2), [#allocation6], 528  }
  0x87   : > { %866 = vsyncadd (%p1348_p2), [#allocation6], 4294966768  ;;  %v932_v0 = vmov 0.0|0.0   ;;  %vm933_vm0 = vmmov 0   ;;  %v934_v1 = vmov 0.0   ;;  %v255_v2 = vld [vmem:[#allocation5] sm:$0xff] }
  0x88   : > { %530 = vmatprep.subr.bf16.mxu0 %v932_v0  ;;  %527 = vmatprep.mubr.msk.f32.mxu0 %vm933_vm0, %v934_v1  ;;  %v256_v3 = vld [vmem:[#allocation5 + $0x8] sm:$0xff]  ;;  %v257_v4 = vld [vmem:[#allocation5 + $0x10] sm:$0xff]  ;;  %v258_v6 = vld [vmem:[#allocation5 + $0x18] sm:$0xff]  ;;  %vm266_vm1 = vcmask 261120   ;;  %s1349_s2 = sld [smem:[#allocation13_spill]]  ;;  %s251_s29 = sand.u32 1, %s877_s13  }
  0x89   : > { %v531_v5 = vpack.c.bf16 %v256_v3, %v255_v2  ;;  %v534_v7 = vpack.c.bf16 %v258_v6, %v257_v4  ;;  %v254_v8 = vld [vmem:[%s223_s8] sm:$0xff]  ;;  %s501_s4 = sshll.u32 %s251_s29, 5  ;;  %v502_v9 = vld [vmem:[#allocation7] ss:$0 sm:$0xff]  ;;  %vm340_vm2 = vcmask 64512   ;;  %s935_s10 = smov 104  }
  0x8a   : > { %s936_s26 = smov 120   ;;  %s253_s1 = scalar_lea.vmem [#allocation8], %s501_s4 }
  0x8b   : > { %532 = vmatpush3.bf16.msra.mxu0 %v531_v5  ;;  %s937_s11 = smov 112   ;;  %s509_s28 = sshll.u32 %s913_s22, 3 }
  0x8c   : > { %533 = vmatprep.subr.bf16.mxu0 %v932_v0  ;;  %s375_s5 = sshll.u32 %s253_s1, 4  ;;  %s1350_s8 = sld [smem:[#allocation18_spill]]  ;;  %s1229_s5 = int_to_ptr.vmem [resolvable:$true] %s375_s5 }
  0x8d   : > { %s1237_s22 = scalar_lea.sflag [#allocation4], %s251_s29  ;;  %s775_s4 = scalar_lea.vmem %s1229_s5, 512 }
  0x8e   : > { %s508_s16 = sshll.u32 %s1349_s2, 2  ;;  %p776_p0 = scmp.ne.s32.totalorder %s1229_s5, %s775_s4 }
  0x8f   : > { %535 = vmatpush3.bf16.msra.mxu0 %v534_v7  ;;  %s372_s21 = sadd.s32 %s509_s28, %s508_s16  ;;  %p1351_p8 = scmp.ne.s32.totalorder %s1344_s27, 0 }
  0x90   : > { %s510_s3 = sshll.u32 %s372_s21, 7 }
  0x91   : > { %p777_p4 = pnand %p776_p0, %p1351_p8 }
  0x92   : > { %528 = vmatmul.mubr.msk.f32.vlgmr.msra.gmra.mrb[0].mxu0 %vm266_vm1, %v254_v8  ;;  %s1234_s2 = scalar_lea.hbm %s1350_s8, %s510_s3 }
  0x93   : > { %p778_p11 = pneg %p777_p4 }
 0x165   : > { %v336_v10 = vpop.f32.mrb[0].mxu0 }
 0x166   : > { %v337_v11 = vadd.f32 %v502_v9, %v336_v10  ;;  %v529_v12 = vpop.f32.mrb[1].mxu0 }
 0x168   : > { %353 = vrot.lane.b32.xlu1 %v337_v11, %s935_s10  ;;  %343 = vrot.lane.b32.xlu0 %v337_v11, %s936_s26  ;;  %341 = vst.msk [vmem:[%s253_s1] sm:$0xff] %vm340_vm2, %v337_v11  ;;  %s938_s10 = smov [#allocation8]  }
 0x169   : > { %s779_s26 = sshll.u32 %s938_s10, 4  ;;  %s780_s26 = int_to_ptr.vmem [resolvable:$false] %s779_s26 }
 0x16a   : > { %p782_p12 = scmp.lt.s32.totalorder %s1229_s5, %s780_s26 }
 0x16c   : > { %348 = vrot.lane.b32.xlu0 %v337_v11, %s937_s11  ;;  %s781_s11 = scalar_lea.vmem %s780_s26, 1024 }
 0x16d   : > { %p783_p10 = scmp.lt.s32.totalorder %s781_s11, %s775_s4 }
 0x16f   : > { %p784_p3 = por %p783_p10, %p782_p12 }
 0x171   : > { %p785_p9 = pnand %p784_p3, %p778_p11 }
 0x1da   : > { %v354_v13 = vpop.permute.xlu1 %353  ;;  %v344_v14 = vpop.permute.xlu0 %343 }
 0x1db   : > { %506 = vst.msk [vmem:[%s253_s1 + $0x18] sm:$0xff] %vm340_vm2, %v354_v13  ;;  %504 = vst.msk [vmem:[%s253_s1 + $0x8] sm:$0xff] %vm340_vm2, %v344_v14 }
 0x1de   : > { %v349_v15 = vpop.permute.xlu0 %348 }
 0x1df   : > { %505 = vst.msk [vmem:[%s253_s1 + $0x10] sm:$0xff] %vm340_vm2, %v349_v15 }
 0x1e0   : > { %788 = shalt.err (!%p785_p9)
}
 0x1e1   : > { %s789_s29 = scalar_lea.hbm %s1234_s2, 512  ;;  %s793_s28 = scalar_lea.hbm %s1350_s8, 3072 }
 0x1e2   : > { %p790_p13 = scmp.ne.s32.totalorder %s1234_s2, %s789_s29  ;;  %p794_p6 = scmp.lt.u32.totalorder %s1234_s2, %s1350_s8 }
 0x1e3   : > { %p795_p5 = scmp.lt.u32.totalorder %s793_s28, %s789_s29  ;;  %p797_p0 = scmp.lt.u32.totalorder %s789_s29, %s1234_s2 }
 0x1e4   : > { %p791_p7 = pnand %p790_p13, %p1351_p8 }
 0x1e5   : > { %p796_p2 = por %p795_p5, %p794_p6 }
 0x1e6   : > { %p792_p1 = pneg %p791_p7 }
 0x1e7   : > { %p798_p4 = por %p797_p0, %p796_p2 }
 0x1e9   : > { %p799_p11 = pnand %p798_p4, %p792_p1 }
 0x1eb   : > { %802 = shalt.err (!%p799_p11)
}
 0x1ec   : > { %s939_s6 = smov 128   ;;  %s940_s30 = smov 8  }
 0x1ed   : > { %542 = dma.vmem_to_hbm [thread:$0]  (%p1351_p8), %s1229_s5, 512, %s1234_s2, %s1237_s22, %s939_s6, %s939_s6, %s940_s30  }
 0x1ee PF: > { %p560_p12 = scmp.ge.s32.totalorder %s925_s25, 2  ;;  %s390_s4 = sand.u32 1, %s873_s12  }
 0x1ef   : > { %p1352_p10 = scmp.ne.s32.totalorder %s1345_s9, 0  ;;  %s391_s10 = scalar_lea.sflag [#allocation4], %s390_s4 }
 0x1f1   : > { %p556_p3 = pnand %p560_p12, %p1352_p10 }
 0x1f3   : > { %868 = dma.done.wait (!%p556_p3), %s391_s10, 512  }
 0x1f4   : > { %870 = vsyncadd (!%p556_p3), %s391_s10, 4294966784  ;;  %s20_s25 = sadd.s32 1, %s925_s25   ;;  %s1354_s27 = sld [smem:[#allocation12_spill]] }
 0x1f5   : > { %p1266_p9 = scmp.ge.s32.totalorder %s20_s25, 8   ;;  %s1355_s5 = smov %s1139_s15 }
 0x1f6   : > { %s1356_s9 = sld [smem:[#allocation14_spill]]  ;;  %s1357_s2 = sld [smem:[#allocation15_spill]] }
 0x1f7   : > { %s1358_s12 = smov %s877_s13  ;;  %s1359_s13 = smov %s881_s14 }
 0x1f8   : > { %s1360_s14 = smov %s1159_s18  ;;  %s1362_s16 = smov %s893_s17 }
 0x1f9   : > { %s1363_s17 = smov %s1152_s7  ;;  %s1364_s18 = smov %s901_s19 }
 0x1fa   : > { %s1361_s15 = smov %s1354_s27  ;;  %s1365_s19 = smov %s905_s20 }
 0x1fb   : > { %s1366_s20 = smov %s1355_s5  ;;  %s1367_s21 = smov %s917_s23 }
 0x1fc   : > { %s1368_s22 = smov %s921_s24  ;;  %s1369_s23 = smov %s1356_s9 }
 0x1fd   : > { %s1370_s24 = smov %s1357_s2  ;;  %19 = sbr.rel (!%p1266_p9) target bundleno = 15 (0xf), region = 90 }
 0x204   :  { %396 = vsyncpa [#allocation3], 1 }
 0x205   :  { %398 = vsyncpa [#allocation3 + $0x1], 1 }
 0x206   :  { %399 = vsyncpa [#allocation6], 1 }
 0x207   :  { %400 = vsyncpa [#allocation4], 1 }
 0x208   :  { %402 = vsyncpa [#allocation4 + $0x1], 1 }

// kernel: tpu_custom_call.1
= control target key start
LH: loop header
LB: loop body
LE: loop exit
PB: predicated region body
PF: predicated region fallthrough
CT: control target
= control target key end

     0   :  { %s1368_s0 = inlined_call_operand.hbm [shape: f32[2,8,32], index: 0, kind: input, shape index: {}]   ;;  %s1369_s1 = inlined_call_operand.hbm [shape: f32[3,32,32], index: 1, kind: input, shape index: {}]   ;;  %s1370_s2 = inlined_call_operand.hbm [shape: f32[3,1,32], index: 2, kind: input, shape index: {}]   ;;  %s1371_s3 = inlined_call_operand.hbm [shape: f32[3,2,4,8,8], index: 3, kind: output, shape index: {}]  }
   0x1   :  { %1384 = sst [smem:[#allocation21_spill]] %s1368_s0 }
   0x2   :  { %1385 = sst [smem:[#allocation22_spill]] %s1369_s1 }
   0x3   :  { %1386 = sst [smem:[#allocation23_spill]] %s1371_s3 }
   0x4   :  { %8 = vsyncpa [#allocation3], 0 }
   0x5   :  { %10 = vsyncpa [#allocation3 + $0x1], 0 }
   0x6   :  { %11 = vsyncpa [#allocation6], 0 }
   0x7   :  { %13 = vsyncpa [#allocation6 + $0x1], 0 }
   0x8   :  { %14 = vsyncpa [#allocation4], 0 }
   0x9   :  { %16 = vsyncpa [#allocation4 + $0x1], 0  ;;  %s1006_s12 = smov 0   ;;  %s1008_s13 = smov 0  }
   0xa   :  { %s1010_s14 = smov 0   ;;  %s1012_s15 = smov 0  }
   0xb   :  { %s1014_s16 = smov 0   ;;  %s1016_s17 = smov 0  }
   0xc   :  { %s1018_s18 = smov 0   ;;  %s1020_s19 = smov 0  }
   0xd   :  { %s1022_s20 = smov 0   ;;  %s1024_s21 = smov 0  }
   0xe   :  { %s1026_s22 = smov 0   ;;  %s1028_s23 = smov 0  }
   0xf   :  { %s1030_s24 = smov 0   ;;  %s1032_s25 = smov 0  }
  0x10 LB: > { %1387 = sst [smem:[#allocation12_spill]] %s950_s20  ;;  %p1373_p0 = scmp.eq.s32.totalorder %s970_s25, 0  ;;  %s970_s25 = sphi %s1032_s25, %s22_s25   ;;  %s966_s24 = sphi %s1030_s24, %s1438_s24   ;;  %s962_s23 = sphi %s1028_s23, %s1427_s23   ;;  %s958_s22 = sphi %s1026_s22, %s1437_s22   ;;  %s954_s21 = sphi %s1024_s21, %s1426_s21   ;;  %s950_s20 = sphi %s1022_s20, %s1425_s20   ;;  %s946_s19 = sphi %s1020_s19, %s1436_s19   ;;  %s942_s18 = sphi %s1018_s18, %s1435_s18   ;;  %s938_s17 = sphi %s1016_s17, %s1434_s17   ;;  %s934_s16 = sphi %s1014_s16, %s1433_s16   ;;  %s930_s15 = sphi %s1012_s15, %s1432_s15   ;;  %s926_s14 = sphi %s1010_s14, %s1431_s14   ;;  %s922_s13 = sphi %s1008_s13, %s1430_s13   ;;  %s918_s12 = sphi %s1006_s12, %s1429_s12  }
  0x11   : > { %1388 = sst [smem:[#allocation13_spill]] %s954_s21  ;;  %p83_p1 = scmp.ne.s32.totalorder %s938_s17, %s934_s16 }
  0x12   : > { %1389 = sst [smem:[#allocation14_spill]] %s958_s22  ;;  %p1372_p4 = scmp.lt.s32.totalorder %s970_s25, 6 }
  0x13   : > { %1390 = sst [smem:[#allocation15_spill]] %s962_s23  ;;  %p85_p3 = por %p83_p1, %p1373_p0 }
  0x14   : > { %s188_s26 = sand.u32 1, %s970_s25   ;;  %s1374_s27 = sand.u32 1, %s938_s17  }
  0x15   : > { %s542_s28 = sshll.u32 %s1374_s27, 5  ;;  %s561_s29 = sshll.u32 %s966_s24, 9 }
  0x16   : > { %s1391_s1 = sld [smem:[#allocation22_spill]]  ;;  %s192_s6 = scalar_lea.vmem [#allocation5], %s542_s28 }
  0x17   : > { %s199_s7 = sshll.u32 %s192_s6, 4  ;;  %p1098_p5 = pnand %p1372_p4, %p85_p3  ;;  %s1094_s7 = int_to_ptr.vmem [resolvable:$true] %s199_s7 }
  0x18   : > { %p546_p6 = scmp.ge.s32.totalorder %s970_s25, 1  ;;  %s1103_s9 = scalar_lea.sflag [#allocation6], %s188_s26 }
  0x19   : > { %p1380_p8 = pneg %p1098_p5 }
  0x1c   : > { %s1092_s5 = scalar_lea.hbm %s1391_s1, %s561_s29  ;;  %s735_s29 = scalar_lea.hbm %s1391_s1, 1536 }
  0x1d   : > { %s730_s10 = scalar_lea.hbm %s1092_s5, 512  ;;  %p736_p11 = scmp.lt.u32.totalorder %s1092_s5, %s1391_s1 }
  0x1e   : > { %p731_p7 = scmp.ne.s32.totalorder %s1092_s5, %s730_s10  ;;  %p737_p12 = scmp.lt.u32.totalorder %s735_s29, %s730_s10 }
  0x1f   : > { %p739_p1 = scmp.lt.u32.totalorder %s730_s10, %s1092_s5 }
  0x20   : > { %p733_p9 = pnand %p1380_p8, %p731_p7  ;;  %p738_p13 = por %p737_p12, %p736_p11 }
  0x22   : > { %p734_p10 = pneg %p733_p9  ;;  %p740_p3 = por %p739_p1, %p738_p13 }
  0x24   : > { %p741_p4 = pnand %p740_p3, %p734_p10 }
  0x26   : > { %744 = shalt.err (!%p741_p4)
}
  0x27   : > { %s745_s26 = scalar_lea.vmem %s1094_s7, 512  ;;  %s972_s6 = smov [#allocation5]  }
  0x28   : > { %p746_p7 = scmp.ne.s32.totalorder %s1094_s7, %s745_s26  ;;  %s750_s11 = sshll.u32 %s972_s6, 4  ;;  %s751_s11 = int_to_ptr.vmem [resolvable:$false] %s750_s11 }
  0x29   : > { %s752_s28 = scalar_lea.vmem %s751_s11, 1024  ;;  %p753_p0 = scmp.lt.s32.totalorder %s1094_s7, %s751_s11 }
  0x2a   : > { %p748_p9 = pnand %p746_p7, %p1380_p8  ;;  %p754_p11 = scmp.lt.s32.totalorder %s752_s28, %s745_s26 }
  0x2c   : > { %p749_p2 = pneg %p748_p9  ;;  %p755_p12 = por %p754_p11, %p753_p0 }
  0x2e   : > { %p756_p13 = pnand %p755_p12, %p749_p2 }
  0x30   : > { %759 = shalt.err (!%p756_p13)
}
  0x31   : > { %s973_s10 = smov 128   ;;  %s974_s29 = smov 8  }
  0x32   : > { %598 = dma.hbm_to_vmem [thread:$0]  (!%p1098_p5), %s1092_s5, 512, %s1094_s7, %s1103_s9, %s973_s10, %s973_s10, %s974_s29  }
  0x33   : > { %p224_p0 = scmp.lt.s32.totalorder %s970_s25, 7  ;;  %s1139_s4 = sadd.s32 4294967295, %s970_s25  }
  0x34   : > { %s37_s6 = sadd.s32 1, %s962_s23  ;;  %s41_s11 = sadd.s32 1, %s966_s24 }
  0x35   : > { %p1134_p2 = pnand %p546_p6, %p224_p0  ;;  %p39_p4 = scmp.ge.s32.totalorder %s37_s6, 2 }
  0x36   : > { %s50_s28 = sadd.s32 1, %s950_s20  ;;  %p57_p10 = scmp.ne.s32.totalorder %s950_s20, %s946_s19 }
  0x37   : > { %s1393_s30 = scalar_select %p1134_p2, 1, 0 }
  0x38   : > { %p63_p1 = scmp.ne.s32.totalorder %s946_s19, %s942_s18  ;;  %s1440_s6 = smov (%p39_p4, %s37_s6), 0 }
  0x39   : > { %1394 = sst [smem:[#allocation16_spill]] %s1440_s6  ;;  %s1442_s11 = smov (!%p39_p4, %s41_s11), %s966_s24 }
  0x3a   : > { %s45_s5 = ssub.s32 %s962_s23, %s1440_s6  ;;  %p1395_p6 = scmp.eq.s32.totalorder %s970_s25, 0 }
  0x3b   : > { %p43_p7 = scmp.ge.s32.totalorder %s1442_s11, 3  ;;  %p48_p9 = scmp.eq.s32.totalorder %s45_s5, 0 }
  0x3c   : > { %p1156_p3 = por %p1395_p6, %p57_p10  ;;  %p64_p11 = scmp.eq.s32.totalorder %s1139_s4, 0 }
  0x3d   : > { %s76_s18 = sadd.s32 1, %s938_s17  ;;  %s1444_s11 = smov (%p43_p7, %s1442_s11), 0 }
  0x3e   : > { %1397 = sst [smem:[#allocation17_spill]] %s1444_s11  ;;  %p1167_p12 = por %p64_p11, %p63_p1 }
  0x3f   : > { %s1165_s10 = scalar_select %p48_p9, %s950_s20, %s50_s28  }
  0x40   : > { %s1399_s29 = scalar_select %p1167_p12, 1, 0 }
  0x41   : > { %1398 = sst [smem:[#allocation18_spill]] %s1165_s10  ;;  %s73_s27 = ssub.s32 %s966_s24, %s1444_s11 }
  0x42   : > { %p74_p13 = scmp.eq.s32.totalorder %s73_s27, 0  ;;  %p1400_p0 = scmp.ne.s32.totalorder %s934_s16, %s930_s15 }
  0x43   : > { %s127_s1 = sor.u32 %s73_s27, %s45_s5  ;;  %s132_s6 = sadd.s32 1, %s926_s14 }
  0x44   : > { %p1176_p4 = por %p1400_p0, %p64_p11  ;;  %p130_p10 = scmp.eq.s32.totalorder %s127_s1, 0 }
  0x45   : > { %s1182_s3 = scalar_select %p74_p13, %s938_s17, %s76_s18  }
  0x46   : > { %s1401_s26 = scalar_select %p1176_p4, 1, 0 }
  0x47   : > { %1402 = sst [smem:[#allocation19_spill]] %s1182_s3  ;;  %p142_p6 = scmp.ne.s32.totalorder %s926_s14, %s922_s13 }
  0x48   : > { %p143_p7 = scmp.eq.s32.totalorder %s1139_s4, 5  ;;  %p148_p1 = scmp.ne.s32.totalorder %s922_s13, %s918_s12 }
  0x49   : > { %s1190_s28 = scalar_select %p130_p10, %s926_s14, %s132_s6  }
  0x4a   : > { %p1192_p9 = por %p143_p7, %p142_p6  ;;  %s1405_s15 = sadd.s32 4294967294, %s970_s25  }
  0x4b   : > { %1403 = sst [smem:[#allocation20_spill]] %s1190_s28  ;;  %p149_p11 = scmp.eq.s32.totalorder %s1405_s15, 5 }
  0x4c   : > { %s1404_s11 = scalar_select %p1192_p9, 1, 0 }
  0x4d   : > { %s169_s10 = sand.u32 1, %s950_s20   ;;  %s541_s22 = sshll.u32 %s962_s23, 7 }
  0x4e   : > { %p1200_p0 = por %p149_p11, %p148_p1  ;;  %s540_s27 = sshll.u32 %s169_s10, 3 }
  0x4f   : > { %s1407_s0 = sld [smem:[#allocation21_spill]]  ;;  %p1408_p13 = scmp.lt.s32.totalorder %s970_s25, 6 }
  0x50   : > { %s1406_s21 = scalar_select %p1200_p0, 1, 0 }
  0x51   : > { %p1213_p10 = pnand %p1408_p13, %p1156_p3  ;;  %s173_s15 = scalar_lea.vmem [#allocation2], %s540_s27 }
  0x52   : > { %s181_s23 = sshll.u32 %s173_s15, 4  ;;  %s170_s20 = scalar_lea.sflag [#allocation3], %s169_s10  ;;  %s1217_s23 = int_to_ptr.vmem [resolvable:$true] %s181_s23 }
  0x53   : > { %p762_p7 = pneg %p1213_p10 }
  0x55   : > { %s1207_s18 = scalar_lea.hbm %s1407_s0, %s541_s22  ;;  %s765_s1 = scalar_lea.hbm %s1407_s0, 256 }
  0x56   : > { %s760_s5 = scalar_lea.hbm %s1207_s18, 128  ;;  %p766_p3 = scmp.lt.u32.totalorder %s1207_s18, %s1407_s0 }
  0x57   : > { %p761_p6 = scmp.ne.s32.totalorder %s1207_s18, %s760_s5  ;;  %p767_p13 = scmp.lt.u32.totalorder %s765_s1, %s760_s5 }
  0x58   : > { %p769_p0 = scmp.lt.u32.totalorder %s760_s5, %s1207_s18 }
  0x59   : > { %p763_p1 = pnand %p762_p7, %p761_p6  ;;  %p768_p8 = por %p767_p13, %p766_p3 }
  0x5b   : > { %p764_p11 = pneg %p763_p1  ;;  %p770_p9 = por %p769_p0, %p768_p8 }
  0x5d   : > { %p771_p4 = pnand %p770_p9, %p764_p11 }
  0x5f   : > { %774 = shalt.err (!%p771_p4)
}
  0x60   : > { %s775_s10 = scalar_lea.vmem %s1217_s23, 128  ;;  %s975_s27 = smov [#allocation2]  }
  0x61   : > { %p776_p6 = scmp.ne.s32.totalorder %s1217_s23, %s775_s10  ;;  %s780_s15 = sshll.u32 %s975_s27, 4  ;;  %s781_s15 = int_to_ptr.vmem [resolvable:$false] %s780_s15 }
  0x62   : > { %s782_s3 = scalar_lea.vmem %s781_s15, 256  ;;  %p783_p2 = scmp.lt.s32.totalorder %s1217_s23, %s781_s15 }
  0x63   : > { %p778_p1 = pnand %p776_p6, %p762_p7  ;;  %p784_p3 = scmp.lt.s32.totalorder %s782_s3, %s775_s10 }
  0x65   : > { %p779_p12 = pneg %p778_p1  ;;  %p785_p13 = por %p784_p3, %p783_p2 }
  0x67   : > { %p786_p8 = pnand %p785_p13, %p779_p12 }
  0x69   : > { %789 = shalt.err (!%p786_p8)
}
  0x6a   : > { %595 = dma.hbm_to_vmem [thread:$0]  (!%p1213_p10), %s1207_s18, 128, %s1217_s23, %s170_s20  }
  0x6b   : > { %s545_s28 = sshll.u32 %s966_s24, 4  ;;  %s1410_s5 = sand.u32 1, %s938_s17  }
  0x6c   : > { %s212_s22 = scalar_lea.vmem [#allocation7], %s1410_s5  ;;  %s217_s15 = scalar_lea.hbm %s1370_s2, %s545_s28 }
  0x6d   : > { %s219_s7 = sshll.u32 %s212_s22, 4  ;;  %s790_s10 = scalar_lea.hbm %s217_s15, 16  ;;  %s220_s7 = int_to_ptr.vmem [resolvable:$true] %s219_s7 }
  0x6e   : > { %p791_p2 = scmp.ne.s32.totalorder %s217_s15, %s790_s10  ;;  %p1411_p12 = pneg %p1098_p5 }
  0x6f   : > { %s795_s0 = scalar_lea.hbm %s1370_s2, 48  ;;  %p796_p0 = scmp.lt.u32.totalorder %s217_s15, %s1370_s2 }
  0x70   : > { %p793_p4 = pnand %p791_p2, %p1411_p12  ;;  %p797_p10 = scmp.lt.u32.totalorder %s795_s0, %s790_s10 }
  0x71   : > { %p799_p11 = scmp.lt.u32.totalorder %s790_s10, %s217_s15 }
  0x72   : > { %p794_p9 = pneg %p793_p4  ;;  %p798_p7 = por %p797_p10, %p796_p0 }
  0x74   : > { %p800_p6 = por %p799_p11, %p798_p7 }
  0x76   : > { %p801_p1 = pnand %p800_p6, %p794_p9 }
  0x78   : > { %804 = shalt.err (!%p801_p1)
}
  0x79   : > { %s805_s18 = scalar_lea.vmem %s220_s7, 16  ;;  %p1412_p13 = pmov %p1411_p12 }
  0x7a   : > { %p806_p3 = scmp.ne.s32.totalorder %s220_s7, %s805_s18  ;;  %s976_s28 = smov [#allocation7]  }
  0x7b   : > { %s810_s5 = sshll.u32 %s976_s28, 4  ;;  %s811_s5 = int_to_ptr.vmem [resolvable:$false] %s810_s5 }
  0x7c   : > { %p808_p8 = pnand %p806_p3, %p1412_p13  ;;  %s812_s22 = scalar_lea.vmem %s811_s5, 32 }
  0x7d   : > { %p813_p12 = scmp.lt.s32.totalorder %s220_s7, %s811_s5  ;;  %p814_p4 = scmp.lt.s32.totalorder %s812_s22, %s805_s18 }
  0x7e   : > { %p809_p2 = pneg %p808_p8 }
  0x7f   : > { %p815_p0 = por %p814_p4, %p813_p12 }
  0x81   : > { %p816_p10 = pnand %p815_p0, %p809_p2 }
  0x83   : > { %819 = shalt.err (!%p816_p10)
}
  0x84   : > { %601 = dma.hbm_to_vmem [thread:$0]  (!%p1098_p5), %s217_s15, 16, %s220_s7, %s1103_s9  }
  0x85   : > { %p1413_p9 = scmp.ne.s32.totalorder %s1393_s30, 0 }
  0x86   : > { %s230_s0 = sand.u32 (!%p1413_p9), 1, %s946_s19   ;;  %p1414_p7 = scmp.ne.s32.totalorder (!%p1413_p9), %s1399_s29, 0 }
  0x87   : > { %228 = sbr.rel (%p1413_p9) target bundleno = 506 (0x1fa), region = 32  ;;  %s547_s1 = sshll.u32 (!%p1413_p9), %s230_s0, 3 }
  0x88   : > { %s231_s27 = scalar_lea.sflag (!%p1413_p9), [#allocation3], %s230_s0  ;;  %s234_s10 = scalar_lea.vmem (!%p1413_p9), [#allocation2], %s547_s1 }
  0x8e   : > { %905 = dma.done.wait (%p1414_p7), %s231_s27, 128  }
  0x8f   : > { %907 = vsyncadd (%p1414_p7), %s231_s27, 4294967168  ;;  %s239_s8 = sand.u32 1, %s1139_s4   ;;  %s241_s6 = sand.u32 1, %s934_s16  }
  0x90   : > { %s548_s9 = sshll.u32 %s241_s6, 5  ;;  %s240_s7 = scalar_lea.sflag [#allocation6], %s239_s8 }
  0x91   : > { %s243_s30 = scalar_lea.vmem [#allocation5], %s548_s9  ;;  %p1415_p5 = scmp.ne.s32.totalorder %s1401_s26, 0 }
  0x93   : > { %909 = dma.done.wait (%p1415_p5), %s240_s7, 528  }
  0x94   : > { %911 = vsyncadd (%p1415_p5), %s240_s7, 4294966768  ;;  %v977_v0 = vmov 0.0|0.0   ;;  %vm978_vm0 = vmmov 0   ;;  %v979_v1 = vmov 0.0   ;;  %v284_v2 = vld [vmem:[%s243_s30] sm:$0xff]  ;;  %v285_v3 = vld [vmem:[%s243_s30 + $0x8] sm:$0xff] }
  0x95   : > { %578 = vmatprep.subr.bf16.mxu0 %v977_v0  ;;  %575 = vmatprep.mubr.msk.f32.mxu0 %vm978_vm0, %v979_v1  ;;  %v286_v4 = vld [vmem:[%s243_s30 + $0x10] sm:$0xff]  ;;  %v579_v5 = vpack.c.bf16 %v285_v3, %v284_v2  ;;  %v287_v6 = vld [vmem:[%s243_s30 + $0x18] sm:$0xff]  ;;  %vm295_vm1 = vcmask 261120   ;;  %s280_s4 = sand.u32 1, %s922_s13   ;;  %s1416_s26 = sld [smem:[#allocation13_spill]]  ;;  %vm369_vm2 = vcmask 64512  }
  0x96   : > { %v582_v7 = vpack.c.bf16 %v287_v6, %v286_v4  ;;  %v283_v8 = vld [vmem:[%s234_s10] sm:$0xff]  ;;  %s549_s29 = sshll.u32 %s280_s4, 5  ;;  %s1417_s15 = sld [smem:[#allocation14_spill]] }
  0x97   : > { %580 = vmatpush3.bf16.msra.mxu0 %v579_v5  ;;  %s251_s3 = scalar_lea.vmem [#allocation7], %s241_s6  ;;  %s980_s20 = smov 104  }
  0x98   : > { %581 = vmatprep.subr.bf16.mxu0 %v977_v0  ;;  %v550_v9 = vld [vmem:[%s251_s3] ss:$0 sm:$0xff]  ;;  %s981_s23 = smov 120   ;;  %s282_s18 = scalar_lea.vmem [#allocation8], %s549_s29 }
  0x99   : > { %s982_s28 = smov 112   ;;  %s404_s1 = sshll.u32 %s282_s18, 4  ;;  %s1284_s1 = int_to_ptr.vmem [resolvable:$true] %s404_s1 }
  0x9a   : > { %s1418_s6 = sld [smem:[#allocation23_spill]]  ;;  %s1292_s7 = scalar_lea.sflag [#allocation4], %s280_s4 }
  0x9b   : > { %583 = vmatpush3.bf16.msra.mxu0 %v582_v7  ;;  %s556_s5 = sshll.u32 %s1416_s26, 2  ;;  %s820_s30 = scalar_lea.vmem %s1284_s1, 512 }
  0x9c   : > { %s557_s22 = sshll.u32 %s1417_s15, 3  ;;  %p821_p11 = scmp.ne.s32.totalorder %s1284_s1, %s820_s30 }
  0x9d   : > { %s401_s0 = sadd.s32 %s557_s22, %s556_s5  ;;  %p1419_p6 = scmp.ne.s32.totalorder %s1404_s11, 0 }
  0x9e   : > { %576 = vmatmul.mubr.msk.f32.vlgmr.msra.gmra.mrb[0].mxu0 %vm295_vm1, %v283_v8  ;;  %s558_s27 = sshll.u32 %s401_s0, 7  ;;  %s983_s26 = smov [#allocation8]  }
  0x9f   : > { %p822_p1 = pnand %p821_p11, %p1419_p6  ;;  %s824_s29 = sshll.u32 %s983_s26, 4  ;;  %s825_s29 = int_to_ptr.vmem [resolvable:$false] %s824_s29 }
  0xa0   : > { %s1289_s9 = scalar_lea.hbm %s1418_s6, %s558_s27  ;;  %s826_s15 = scalar_lea.vmem %s825_s29, 1024 }
  0xa1   : > { %p823_p3 = pneg %p822_p1  ;;  %p827_p13 = scmp.lt.s32.totalorder %s1284_s1, %s825_s29 }
  0xa2   : > { %p828_p8 = scmp.lt.s32.totalorder %s826_s15, %s820_s30 }
  0xa4   : > { %p829_p2 = por %p828_p8, %p827_p13 }
  0xa6   : > { %p830_p12 = pnand %p829_p2, %p823_p3 }
 0x171   : > { %v365_v10 = vpop.f32.mrb[0].mxu0 }
 0x172   : > { %v366_v11 = vadd.f32 %v550_v9, %v365_v10  ;;  %v577_v12 = vpop.f32.mrb[1].mxu0 }
 0x174   : > { %382 = vrot.lane.b32.xlu1 %v366_v11, %s980_s20  ;;  %372 = vrot.lane.b32.xlu0 %v366_v11, %s981_s23  ;;  %370 = vst.msk [vmem:[%s282_s18] sm:$0xff] %vm369_vm2, %v366_v11 }
 0x178   : > { %377 = vrot.lane.b32.xlu0 %v366_v11, %s982_s28 }
 0x1e6   : > { %v383_v13 = vpop.permute.xlu1 %382  ;;  %v373_v14 = vpop.permute.xlu0 %372 }
 0x1e7   : > { %554 = vst.msk [vmem:[%s282_s18 + $0x18] sm:$0xff] %vm369_vm2, %v383_v13  ;;  %552 = vst.msk [vmem:[%s282_s18 + $0x8] sm:$0xff] %vm369_vm2, %v373_v14 }
 0x1ea   : > { %v378_v15 = vpop.permute.xlu0 %377 }
 0x1eb   : > { %553 = vst.msk [vmem:[%s282_s18 + $0x10] sm:$0xff] %vm369_vm2, %v378_v15 }
 0x1ec   : > { %833 = shalt.err (!%p830_p12)
}
 0x1ed   : > { %s834_s4 = scalar_lea.hbm %s1289_s9, 512  ;;  %s838_s23 = scalar_lea.hbm %s1418_s6, 3072 }
 0x1ee   : > { %p835_p4 = scmp.ne.s32.totalorder %s1289_s9, %s834_s4  ;;  %p839_p9 = scmp.lt.u32.totalorder %s1289_s9, %s1418_s6 }
 0x1ef   : > { %p840_p7 = scmp.lt.u32.totalorder %s838_s23, %s834_s4  ;;  %p842_p11 = scmp.lt.u32.totalorder %s834_s4, %s1289_s9 }
 0x1f0   : > { %p836_p0 = pnand %p835_p4, %p1419_p6 }
 0x1f1   : > { %p841_p5 = por %p840_p7, %p839_p9 }
 0x1f2   : > { %p837_p10 = pneg %p836_p0 }
 0x1f3   : > { %p843_p1 = por %p842_p11, %p841_p5 }
 0x1f5   : > { %p844_p3 = pnand %p843_p1, %p837_p10 }
 0x1f7   : > { %847 = shalt.err (!%p844_p3)
}
 0x1f8   : > { %s984_s5 = smov 128   ;;  %s985_s22 = smov 8  }
 0x1f9   : > { %590 = dma.vmem_to_hbm [thread:$0]  (%p1419_p6), %s1284_s1, 512, %s1289_s9, %s1292_s7, %s984_s5, %s984_s5, %s985_s22  }
 0x1fa PF: > { %p607_p13 = scmp.ge.s32.totalorder %s970_s25, 2  ;;  %s419_s0 = sand.u32 1, %s918_s12  }
 0x1fb   : > { %p1420_p8 = scmp.ne.s32.totalorder %s1406_s21, 0  ;;  %s420_s27 = scalar_lea.sflag [#allocation4], %s419_s0 }
 0x1fd   : > { %p603_p2 = pnand %p607_p13, %p1420_p8 }
 0x1ff   : > { %913 = dma.done.wait (!%p603_p2), %s420_s27, 512  }
 0x200   : > { %915 = vsyncadd (!%p603_p2), %s420_s27, 4294966784  ;;  %s22_s25 = sadd.s32 1, %s970_s25   ;;  %s1422_s11 = sld [smem:[#allocation20_spill]] }
 0x201   : > { %p1321_p12 = scmp.ge.s32.totalorder %s22_s25, 8   ;;  %s1423_s1 = sld [smem:[#allocation19_spill]] }
 0x202   : > { %s1424_s8 = sld [smem:[#allocation12_spill]]  ;;  %s1425_s20 = sld [smem:[#allocation18_spill]] }
 0x203   : > { %s1426_s21 = sld [smem:[#allocation15_spill]]  ;;  %s1427_s23 = sld [smem:[#allocation16_spill]] }
 0x204   : > { %s1428_s9 = sld [smem:[#allocation17_spill]]  ;;  %s1429_s12 = smov %s922_s13 }
 0x205   : > { %s1430_s13 = smov %s926_s14  ;;  %s1432_s15 = smov %s934_s16 }
 0x206   : > { %s1431_s14 = smov %s1422_s11  ;;  %s1433_s16 = smov %s938_s17 }
 0x207   : > { %s1434_s17 = smov %s1423_s1  ;;  %s1435_s18 = smov %s946_s19 }
 0x208   : > { %s1436_s19 = smov %s1424_s8  ;;  %s1437_s22 = smov %s966_s24 }
 0x209   :  { %21 = sbr.rel (!%p1321_p12) target bundleno = 16 (0x10), region = 104 }
 0x20a   : > { %s1438_s24 = smov %s1428_s9 }
 0x210   :  { %425 = vsyncpa [#allocation3], 1 }
 0x211   :  { %427 = vsyncpa [#allocation3 + $0x1], 1 }
 0x212   :  { %428 = vsyncpa [#allocation6], 1 }
 0x213   :  { %430 = vsyncpa [#allocation6 + $0x1], 1 }
 0x214   :  { %431 = vsyncpa [#allocation4], 1 }
 0x215   :  { %433 = vsyncpa [#allocation4 + $0x1], 1 }

</bundles_post_ra>
